<compile_context>
chip_gen: v5e
topology: v5e:2x2
jax: 0.10.0
libtpu: 0.0.40
codegen_flags: <defaults>
</compile_context>

<pallas_src>
import functools

import jax
import jax.numpy as jnp
from jax.experimental import pallas as pl
from jax.experimental.pallas import tpu as pltpu


def _round_up(x, m):
    return ((x + m - 1) // m) * m


def _tiles_for(K, N):
    """Pick lane-aligned tile sizes (multiples of 128) that divide the padded
    K / N exactly.  tk <= 2048, tn <= 512."""
    Kp = _round_up(K, 128)
    qk = Kp // 128
    dk = max(d for d in range(1, min(qk, 16) + 1) if qk % d == 0)
    tk = 128 * dk
    Np = _round_up(N, 128)
    qn = Np // 128
    dn = max(d for d in range(1, min(qn, 4) + 1) if qn % d == 0)
    tn = 128 * dn
    return Kp, tk, Np, tn


# ---------------------------------------------------------------------------
# Pallas kernel 1: tiled matmul, bf16 operands, f32 accumulation,
#                  fused bias (+ optional ReLU) epilogue.
# ---------------------------------------------------------------------------
def _matmul_kernel(a_ref, w_ref, b_ref, o_ref, acc_ref, *, relu):
    @pl.when(pl.program_id(2) == 0)
    def _():
        acc_ref[...] = jnp.zeros_like(acc_ref)

    acc_ref[...] += jnp.dot(a_ref[...], w_ref[...],
                            preferred_element_type=jnp.float32)

    @pl.when(pl.program_id(2) == pl.num_programs(2) - 1)
    def _():
        r = acc_ref[...] + b_ref[...]
        if relu:
            r = jnp.maximum(r, 0.0)
        o_ref[...] = r.astype(o_ref.dtype)


def prepare_linear(w, b):
    """w: [N, K] (PyTorch out,in layout), b: [N].  Returns pre-padded bf16
    weight [Kp, Np], f32 bias [1, Np] and static tiling metadata."""
    N, K = w.shape
    Kp, tk, Np, tn = _tiles_for(K, N)
    w_p = jnp.zeros((Kp, Np), jnp.bfloat16).at[:K, :N].set(
        jnp.asarray(w, jnp.float32).T.astype(jnp.bfloat16))
    b_p = jnp.zeros((1, Np), jnp.float32).at[0, :N].set(
        jnp.asarray(b, jnp.float32).reshape(-1))
    return {"w": w_p, "b": b_p, "K": K, "N": N, "tk": tk, "tn": tn}


def linear_pallas(a, prep, relu=False):
    """a: [M, K] (any float dtype); returns act(a @ W + b) in f32, [M, N]."""
    M, K = a.shape
    assert K == prep["K"]
    w_p, b_p = prep["w"], prep["b"]
    Kp, Np = w_p.shape
    tk, tn = prep["tk"], prep["tn"]

    tm = min(_round_up(M, 8), 128)
    Mp = _round_up(M, tm)

    # Keep >= 2 tiles on a parallel axis when possible (v7x has 2 TCs; with a
    # single M tile the N axis is the only source of cross-core parallelism).
    if Mp // tm == 1 and Np // tn == 1 and Np // 128 >= 2:
        qn = Np // 128
        dn = max(d for d in range(1, qn) if qn % d == 0)
        tn = 128 * dn

    a_bf = a.astype(jnp.bfloat16)
    if (Mp, Kp) != (M, K):
        a_bf = jnp.zeros((Mp, Kp), jnp.bfloat16).at[:M, :K].set(a_bf)

    grid = (Mp // tm, Np // tn, Kp // tk)
    cost = pl.CostEstimate(
        flops=2 * Mp * Np * Kp,
        transcendentals=0,
        bytes_accessed=Mp * Kp * 2 + Kp * Np * 2 + Np * 4 + Mp * Np * 4)

    out = pl.pallas_call(
        functools.partial(_matmul_kernel, relu=relu),
        out_shape=jax.ShapeDtypeStruct((Mp, Np), jnp.float32),
        grid_spec=pltpu.PrefetchScalarGridSpec(
            num_scalar_prefetch=0,
            grid=grid,
            in_specs=[
                pl.BlockSpec((tm, tk), lambda i, j, k: (i, k)),
                pl.BlockSpec((tk, tn), lambda i, j, k: (k, j)),
                pl.BlockSpec((1, tn), lambda i, j, k: (0, j)),
            ],
            out_specs=pl.BlockSpec((tm, tn), lambda i, j, k: (i, j)),
            scratch_shapes=[pltpu.VMEM((tm, tn), jnp.float32)],
        ),
        compiler_params=pltpu.CompilerParams(
            dimension_semantics=("parallel", "parallel", "arbitrary"),
            vmem_limit_bytes=32 * 1024 * 1024),
        cost_estimate=cost,
    )(a_bf, w_p, b_p)
    return out[:M, :prep["N"]]


# ---------------------------------------------------------------------------
# Pallas kernel 2: fused text CNN branch (conv(k,100)+ReLU+global max, k=2,3,4)
#   Inputs are lane-padded to 128; output is a lane-dense (Bp, 128) slab whose
#   first 3 lanes hold the pooled features (column order k=2, k=3, k=4).
# ---------------------------------------------------------------------------
def _text_cnn_kernel(x_ref, w2_ref, w3_ref, w4_ref, bias_ref, o_ref):
    x = x_ref[...]                        # [Bp, S, Ep]
    bias = bias_ref[...]                  # [1, 128]   (lanes 0..2 used)
    Bp, S, Ep = x.shape
    pooled = []
    for idx, w_ref in enumerate((w2_ref, w3_ref, w4_ref)):
        w = w_ref[...]                    # [k, Ep]
        k = w.shape[0]
        T = S - k + 1
        s = jnp.zeros((Bp, T), jnp.float32)
        for dk in range(k):               # static unroll over kernel height
            s = s + jnp.sum(x[:, dk:dk + T, :] * w[dk][None, None, :], axis=-1)
        s = jnp.maximum(s + bias[:, idx:idx + 1], 0.0)       # conv bias + ReLU
        pooled.append(jnp.max(s, axis=-1, keepdims=True))    # [Bp, 1]
    lane = jax.lax.broadcasted_iota(jnp.int32, (Bp, 128), 1)
    out = jnp.where(lane == 0, pooled[0], 0.0)
    out = jnp.where(lane == 1, pooled[1], out)
    out = jnp.where(lane == 2, pooled[2], out)
    o_ref[...] = out                      # lane-dense full store


def prepare_text(p, embed_dim=100):
    Ep = _round_up(embed_dim, 128)

    def pad_w(w):
        k = w.shape[0]
        return jnp.zeros((k, Ep), jnp.float32).at[:, :embed_dim].set(
            jnp.asarray(w, jnp.float32))

    bias = jnp.zeros((1, 128), jnp.float32).at[0, :3].set(
        jnp.stack([p["tc2_b"], p["tc3_b"], p["tc4_b"]]).astype(jnp.float32))
    return {"w2": pad_w(p["tc2_w"]), "w3": pad_w(p["tc3_w"]),
            "w4": pad_w(p["tc4_w"]), "bias": bias, "E": embed_dim}


def text_cnn_pallas(x, tp):
    B, S, E = x.shape
    assert E == tp["E"]
    Bp = _round_up(B, 8)
    Ep = tp["w2"].shape[1]
    x_p = jnp.zeros((Bp, S, Ep), jnp.float32).at[:B, :, :E].set(
        x.astype(jnp.float32))
    out = pl.pallas_call(
        _text_cnn_kernel,
        out_shape=jax.ShapeDtypeStruct((Bp, 128), jnp.float32),
        grid=(1,),
        in_specs=[
            pl.BlockSpec((Bp, S, Ep), lambda i: (0, 0, 0)),
            pl.BlockSpec(tp["w2"].shape, lambda i: (0, 0)),
            pl.BlockSpec(tp["w3"].shape, lambda i: (0, 0)),
            pl.BlockSpec(tp["w4"].shape, lambda i: (0, 0)),
            pl.BlockSpec((1, 128), lambda i: (0, 0)),
        ],
        out_specs=pl.BlockSpec((Bp, 128), lambda i: (0, 0)),
    )(x_p, tp["w2"], tp["w3"], tp["w4"], tp["bias"])
    return out[:B, :3]


# ---------------------------------------------------------------------------
# Conv2d (NHWC) via im2col + the Pallas matmul (cross-correlation == nn.Conv2d)
# ---------------------------------------------------------------------------
def prepare_conv(w, b):
    """w: PyTorch [OC, C, KH, KW].  Flattened as (KH, KW, C) to match NHWC
    im2col ordering, then prepared like a linear layer."""
    OC, C, KH, KW = w.shape
    w2 = jnp.transpose(w, (0, 2, 3, 1)).reshape(OC, KH * KW * C)
    d = prepare_linear(w2, b)
    d["KH"], d["KW"] = KH, KW
    return d


def conv2d_nhwc_pallas(x, prep, stride=1, padding=0, relu=True):
    B, H, W, C = x.shape
    KH, KW = prep["KH"], prep["KW"]
    xp = jnp.pad(x, ((0, 0), (padding, padding), (padding, padding), (0, 0)))
    OH = (H + 2 * padding - KH) // stride + 1
    OW = (W + 2 * padding - KW) // stride + 1
    patches = []
    for ki in range(KH):
        for kj in range(KW):
            patches.append(jax.lax.slice(
                xp, (0, ki, kj, 0),
                (B, ki + stride * (OH - 1) + 1, kj + stride * (OW - 1) + 1, C),
                (1, stride, stride, 1)))                 # [B, OH, OW, C]
    p = jnp.concatenate(patches, axis=-1)                # [B, OH, OW, KH*KW*C]
    p = p.reshape(B * OH * OW, KH * KW * C)
    out = linear_pallas(p, prep, relu=relu)              # Pallas matmul hot path
    return out.reshape(B, OH, OW, -1)                    # stays NHWC


# plain-JAX glue (small windowed reductions inside the AlexNet submodule)
def max_pool2d_nhwc(x, k, s):
    return jax.lax.reduce_window(x, -jnp.inf, jax.lax.max,
                                 (1, k, k, 1), (1, s, s, 1), "VALID")


def adaptive_avg_pool2d_nhwc(x, oh, ow):
    B, H, W, C = x.shape
    rows = []
    for i in range(oh):
        h0, h1 = (i * H) // oh, -((-(i + 1) * H) // oh)
        cols = []
        for j in range(ow):
            w0, w1 = (j * W) // ow, -((-(j + 1) * W) // ow)
            cols.append(jnp.mean(x[:, h0:h1, w0:w1, :], axis=(1, 2)))
        rows.append(jnp.stack(cols, axis=1))             # [B, ow, C]
    return jnp.stack(rows, axis=1)                       # [B, oh, ow, C]


# ---------------------------------------------------------------------------
# AlexNet (torchvision topology), NHWC end-to-end, Pallas matmul everywhere
# ---------------------------------------------------------------------------
def alexnet_forward(img_nhwc, q):
    x = conv2d_nhwc_pallas(img_nhwc, q["c1"], stride=4, padding=2, relu=True)
    x = max_pool2d_nhwc(x, 3, 2)
    x = conv2d_nhwc_pallas(x, q["c2"], stride=1, padding=2, relu=True)
    x = max_pool2d_nhwc(x, 3, 2)
    x = conv2d_nhwc_pallas(x, q["c3"], stride=1, padding=1, relu=True)
    x = conv2d_nhwc_pallas(x, q["c4"], stride=1, padding=1, relu=True)
    x = conv2d_nhwc_pallas(x, q["c5"], stride=1, padding=1, relu=True)
    x = max_pool2d_nhwc(x, 3, 2)
    x = adaptive_avg_pool2d_nhwc(x, 6, 6)
    x = x.reshape(x.shape[0], -1)       # (h, w, c) order; fc1 weight pre-permuted
    x = linear_pallas(x, q["fc1"], relu=True)
    x = linear_pallas(x, q["fc2"], relu=True)
    x = linear_pallas(x, q["fc3"], relu=False)
    return x                                             # [B, 1000]


# ---------------------------------------------------------------------------
# MMCNN forward
# ---------------------------------------------------------------------------
def mmcnn_forward(x, img, q):
    # text branch: Conv2d(1,1,(k,100)) + ReLU + MaxPool + cat, fused in Pallas
    txt = text_cnn_pallas(x, q["text"])                         # [B, 3]
    # TODO(synk): nn.Dropout layers are identity here (eval/inference mode).
    img_nhwc = jnp.transpose(img, (0, 2, 3, 1))                 # one layout change
    img_feat = alexnet_forward(img_nhwc, q)                     # [B, 1000]
    # Tiny tail linears: plain XLA dot (Pallas launch + lane padding >> work).
    img_feat = img_feat @ q["img_w"].T + q["img_b"]             # [B, 3]
    h = jnp.concatenate([txt, img_feat], axis=1)                # [B, 6]
    sen = h @ q["sen_w"].T + q["sen_b"]                         # [B, sen_class]
    emo = h @ q["emo_w"].T + q["emo_b"]                         # [B, emo_class]
    return sen, emo


# ---------------------------------------------------------------------------
# Parameter init (PyTorch layout) + one-time Pallas preparation
# ---------------------------------------------------------------------------
def init_params(key, sen_class, emo_class):
    keys = iter(jax.random.split(key, 32))

    def w_init(shape, fan_in):
        return jax.random.normal(next(keys), shape, jnp.float32) / jnp.sqrt(
            jnp.float32(fan_in))

    def b_init(shape):
        return 0.01 * jax.random.normal(next(keys), shape, jnp.float32)

    p = {}
    p["tc2_w"] = w_init((2, 100), 200); p["tc2_b"] = b_init(())
    p["tc3_w"] = w_init((3, 100), 300); p["tc3_b"] = b_init(())
    p["tc4_w"] = w_init((4, 100), 400); p["tc4_b"] = b_init(())
    p["c1_w"] = w_init((64, 3, 11, 11), 3 * 121);  p["c1_b"] = b_init((64,))
    p["c2_w"] = w_init((192, 64, 5, 5), 64 * 25);  p["c2_b"] = b_init((192,))
    p["c3_w"] = w_init((384, 192, 3, 3), 192 * 9); p["c3_b"] = b_init((384,))
    p["c4_w"] = w_init((256, 384, 3, 3), 384 * 9); p["c4_b"] = b_init((256,))
    p["c5_w"] = w_init((256, 256, 3, 3), 256 * 9); p["c5_b"] = b_init((256,))
    p["fc1_w"] = w_init((4096, 9216), 9216); p["fc1_b"] = b_init((4096,))
    p["fc2_w"] = w_init((4096, 4096), 4096); p["fc2_b"] = b_init((4096,))
    p["fc3_w"] = w_init((1000, 4096), 4096); p["fc3_b"] = b_init((1000,))
    p["img_w"] = w_init((3, 1000), 1000);    p["img_b"] = b_init((3,))
    p["sen_w"] = w_init((sen_class, 6), 6);  p["sen_b"] = b_init((sen_class,))
    p["emo_w"] = w_init((emo_class, 6), 6);  p["emo_b"] = b_init((emo_class,))
    return p


def prepare_params(p):
    """One-time: transpose + bf16-cast + tile-pad every weight that feeds the
    Pallas matmul.  Done once so no weight copies happen per forward pass."""
    q = {}
    q["text"] = prepare_text(p, embed_dim=p["tc2_w"].shape[1])
    q["c1"] = prepare_conv(p["c1_w"], p["c1_b"])
    q["c2"] = prepare_conv(p["c2_w"], p["c2_b"])
    q["c3"] = prepare_conv(p["c3_w"], p["c3_b"])
    q["c4"] = prepare_conv(p["c4_w"], p["c4_b"])
    q["c5"] = prepare_conv(p["c5_w"], p["c5_b"])
    # fc1 expects PyTorch (C, h, w) flatten; we flatten NHWC (h, w, C), so
    # permute the fc1 weight columns once here.
    fc1_w = p["fc1_w"].reshape(4096, 256, 6, 6).transpose(0, 2, 3, 1)
    fc1_w = fc1_w.reshape(4096, 9216)
    q["fc1"] = prepare_linear(fc1_w, p["fc1_b"])
    q["fc2"] = prepare_linear(p["fc2_w"], p["fc2_b"])
    q["fc3"] = prepare_linear(p["fc3_w"], p["fc3_b"])
    # tiny tail linears stay f32 / plain dot
    for k in ("img_w", "img_b", "sen_w", "sen_b", "emo_w", "emo_b"):
        q[k] = p[k]
    return q


if __name__ == "__main__":
    key = jax.random.PRNGKey(0)
    k_x, k_img, k_p = jax.random.split(key, 3)

    B, S, E = 2, 8, 100            # batch, sentence_max_size, embed dim (=100)
    sen_class, emo_class = 3, 7
    x = jax.random.normal(k_x, (B, S, E), jnp.float32)
    img = jax.random.normal(k_img, (B, 3, 64, 64), jnp.float32)

    params = init_params(k_p, sen_class, emo_class)
    prepped = jax.block_until_ready(prepare_params(params))

    sen, emo = mmcnn_forward(x, img, prepped)
    (sen, emo) = jax.block_until_ready((sen, emo))

    assert sen.shape == (B, sen_class) and emo.shape == (B, emo_class)
    assert bool(jnp.all(jnp.isfinite(sen))) and bool(jnp.all(jnp.isfinite(emo)))
    print("KERNEL_OK")
</pallas_src>

<mosaic_0001>
module attributes {stable_mosaic.version = 11 : i64} {
  func.func @_text_cnn_kernel(%arg0: i32, %arg1: memref<8x8x128xf32, #tpu.memory_space<vmem>>, %arg2: memref<2x128xf32, #tpu.memory_space<vmem>>, %arg3: memref<3x128xf32, #tpu.memory_space<vmem>>, %arg4: memref<4x128xf32, #tpu.memory_space<vmem>>, %arg5: memref<1x128xf32, #tpu.memory_space<vmem>>, %arg6: memref<8x128xf32, #tpu.memory_space<vmem>>) attributes {dimension_semantics = [#tpu.dimension_semantics<arbitrary>], iteration_bounds = array<i64: 1>, scalar_prefetch = 0 : i64, scratch_operands = 0 : i64, tpu.core_type = #tpu.core_type<tc>, window_params = [{pipeline_mode = #tpu.pipeline_mode<synchronous>, transform_indices = @transform_0, window_bounds = array<i64: 8, 8, 128>}, {pipeline_mode = #tpu.pipeline_mode<synchronous>, transform_indices = @transform_1, window_bounds = array<i64: 2, 128>}, {pipeline_mode = #tpu.pipeline_mode<synchronous>, transform_indices = @transform_2, window_bounds = array<i64: 3, 128>}, {pipeline_mode = #tpu.pipeline_mode<synchronous>, transform_indices = @transform_3, window_bounds = array<i64: 4, 128>}, {pipeline_mode = #tpu.pipeline_mode<synchronous>, transform_indices = @transform_4, window_bounds = array<i64: 1, 128>}, {pipeline_mode = #tpu.pipeline_mode<synchronous>, transform_indices = @transform_5, window_bounds = array<i64: 8, 128>}]} {
    %c0 = arith.constant 0 : index
    %c0_0 = arith.constant 0 : index
    %c0_1 = arith.constant 0 : index
    %0 = vector.load %arg1[%c0, %c0_0, %c0_1] : memref<8x8x128xf32, #tpu.memory_space<vmem>>, vector<8x8x128xf32>
    %c0_2 = arith.constant 0 : index
    %c0_3 = arith.constant 0 : index
    %1 = vector.load %arg5[%c0_2, %c0_3] : memref<1x128xf32, #tpu.memory_space<vmem>>, vector<1x128xf32>
    %c0_4 = arith.constant 0 : index
    %c0_5 = arith.constant 0 : index
    %2 = vector.load %arg2[%c0_4, %c0_5] : memref<2x128xf32, #tpu.memory_space<vmem>>, vector<2x128xf32>
    %cst = arith.constant 0.000000e+00 : f32
    %3 = vector.broadcast %cst : f32 to vector<8x7xf32>
    %4 = vector.extract_strided_slice %0 {offsets = [0, 0, 0], sizes = [8, 7, 128], strides = [1, 1, 1]} : vector<8x8x128xf32> to vector<8x7x128xf32>
    %5 = vector.extract_strided_slice %2 {offsets = [0, 0], sizes = [1, 128], strides = [1, 1]} : vector<2x128xf32> to vector<1x128xf32>
    %6 = vector.shape_cast %5 : vector<1x128xf32> to vector<128xf32>
    %7 = vector.shape_cast %6 : vector<128xf32> to vector<1x1x128xf32>
    %8 = vector.broadcast %7 : vector<1x1x128xf32> to vector<8x7x128xf32>
    %9 = arith.mulf %4, %8 : vector<8x7x128xf32>
    %cst_6 = arith.constant dense<0.000000e+00> : vector<8x7xf32>
    %10 = vector.multi_reduction <add>, %9, %cst_6 [2] : vector<8x7x128xf32> to vector<8x7xf32>
    %11 = arith.addf %3, %10 : vector<8x7xf32>
    %12 = vector.extract_strided_slice %0 {offsets = [0, 1, 0], sizes = [8, 7, 128], strides = [1, 1, 1]} : vector<8x8x128xf32> to vector<8x7x128xf32>
    %13 = vector.extract_strided_slice %2 {offsets = [1, 0], sizes = [1, 128], strides = [1, 1]} : vector<2x128xf32> to vector<1x128xf32>
    %14 = vector.shape_cast %13 : vector<1x128xf32> to vector<128xf32>
    %15 = vector.shape_cast %14 : vector<128xf32> to vector<1x1x128xf32>
    %16 = vector.broadcast %15 : vector<1x1x128xf32> to vector<8x7x128xf32>
    %17 = arith.mulf %12, %16 : vector<8x7x128xf32>
    %cst_7 = arith.constant dense<0.000000e+00> : vector<8x7xf32>
    %18 = vector.multi_reduction <add>, %17, %cst_7 [2] : vector<8x7x128xf32> to vector<8x7xf32>
    %19 = arith.addf %11, %18 : vector<8x7xf32>
    %20 = vector.extract_strided_slice %1 {offsets = [0, 0], sizes = [1, 1], strides = [1, 1]} : vector<1x128xf32> to vector<1x1xf32>
    %21 = vector.broadcast %20 : vector<1x1xf32> to vector<8x7xf32>
    %22 = arith.addf %19, %21 : vector<8x7xf32>
    %cst_8 = arith.constant 0.000000e+00 : f32
    %23 = vector.broadcast %cst_8 : f32 to vector<8x7xf32>
    %24 = arith.maximumf %22, %23 : vector<8x7xf32>
    %cst_9 = arith.constant dense<0xFF800000> : vector<8xf32>
    %25 = vector.multi_reduction <maximumf>, %24, %cst_9 [1] : vector<8x7xf32> to vector<8xf32>
    %26 = vector.shape_cast %25 : vector<8xf32> to vector<8x1xf32>
    %c0_10 = arith.constant 0 : index
    %c0_11 = arith.constant 0 : index
    %27 = vector.load %arg3[%c0_10, %c0_11] : memref<3x128xf32, #tpu.memory_space<vmem>>, vector<3x128xf32>
    %cst_12 = arith.constant 0.000000e+00 : f32
    %28 = vector.broadcast %cst_12 : f32 to vector<8x6xf32>
    %29 = vector.extract_strided_slice %0 {offsets = [0, 0, 0], sizes = [8, 6, 128], strides = [1, 1, 1]} : vector<8x8x128xf32> to vector<8x6x128xf32>
    %30 = vector.extract_strided_slice %27 {offsets = [0, 0], sizes = [1, 128], strides = [1, 1]} : vector<3x128xf32> to vector<1x128xf32>
    %31 = vector.shape_cast %30 : vector<1x128xf32> to vector<128xf32>
    %32 = vector.shape_cast %31 : vector<128xf32> to vector<1x1x128xf32>
    %33 = vector.broadcast %32 : vector<1x1x128xf32> to vector<8x6x128xf32>
    %34 = arith.mulf %29, %33 : vector<8x6x128xf32>
    %cst_13 = arith.constant dense<0.000000e+00> : vector<8x6xf32>
    %35 = vector.multi_reduction <add>, %34, %cst_13 [2] : vector<8x6x128xf32> to vector<8x6xf32>
    %36 = arith.addf %28, %35 : vector<8x6xf32>
    %37 = vector.extract_strided_slice %0 {offsets = [0, 1, 0], sizes = [8, 6, 128], strides = [1, 1, 1]} : vector<8x8x128xf32> to vector<8x6x128xf32>
    %38 = vector.extract_strided_slice %27 {offsets = [1, 0], sizes = [1, 128], strides = [1, 1]} : vector<3x128xf32> to vector<1x128xf32>
    %39 = vector.shape_cast %38 : vector<1x128xf32> to vector<128xf32>
    %40 = vector.shape_cast %39 : vector<128xf32> to vector<1x1x128xf32>
    %41 = vector.broadcast %40 : vector<1x1x128xf32> to vector<8x6x128xf32>
    %42 = arith.mulf %37, %41 : vector<8x6x128xf32>
    %cst_14 = arith.constant dense<0.000000e+00> : vector<8x6xf32>
    %43 = vector.multi_reduction <add>, %42, %cst_14 [2] : vector<8x6x128xf32> to vector<8x6xf32>
    %44 = arith.addf %36, %43 : vector<8x6xf32>
    %45 = vector.extract_strided_slice %0 {offsets = [0, 2, 0], sizes = [8, 6, 128], strides = [1, 1, 1]} : vector<8x8x128xf32> to vector<8x6x128xf32>
    %46 = vector.extract_strided_slice %27 {offsets = [2, 0], sizes = [1, 128], strides = [1, 1]} : vector<3x128xf32> to vector<1x128xf32>
    %47 = vector.shape_cast %46 : vector<1x128xf32> to vector<128xf32>
    %48 = vector.shape_cast %47 : vector<128xf32> to vector<1x1x128xf32>
    %49 = vector.broadcast %48 : vector<1x1x128xf32> to vector<8x6x128xf32>
    %50 = arith.mulf %45, %49 : vector<8x6x128xf32>
    %cst_15 = arith.constant dense<0.000000e+00> : vector<8x6xf32>
    %51 = vector.multi_reduction <add>, %50, %cst_15 [2] : vector<8x6x128xf32> to vector<8x6xf32>
    %52 = arith.addf %44, %51 : vector<8x6xf32>
    %53 = vector.extract_strided_slice %1 {offsets = [0, 1], sizes = [1, 1], strides = [1, 1]} : vector<1x128xf32> to vector<1x1xf32>
    %54 = vector.broadcast %53 : vector<1x1xf32> to vector<8x6xf32>
    %55 = arith.addf %52, %54 : vector<8x6xf32>
    %cst_16 = arith.constant 0.000000e+00 : f32
    %56 = vector.broadcast %cst_16 : f32 to vector<8x6xf32>
    %57 = arith.maximumf %55, %56 : vector<8x6xf32>
    %cst_17 = arith.constant dense<0xFF800000> : vector<8xf32>
    %58 = vector.multi_reduction <maximumf>, %57, %cst_17 [1] : vector<8x6xf32> to vector<8xf32>
    %59 = vector.shape_cast %58 : vector<8xf32> to vector<8x1xf32>
    %c0_18 = arith.constant 0 : index
    %c0_19 = arith.constant 0 : index
    %60 = vector.load %arg4[%c0_18, %c0_19] : memref<4x128xf32, #tpu.memory_space<vmem>>, vector<4x128xf32>
    %cst_20 = arith.constant 0.000000e+00 : f32
    %61 = vector.broadcast %cst_20 : f32 to vector<8x5xf32>
    %62 = vector.extract_strided_slice %0 {offsets = [0, 0, 0], sizes = [8, 5, 128], strides = [1, 1, 1]} : vector<8x8x128xf32> to vector<8x5x128xf32>
    %63 = vector.extract_strided_slice %60 {offsets = [0, 0], sizes = [1, 128], strides = [1, 1]} : vector<4x128xf32> to vector<1x128xf32>
    %64 = vector.shape_cast %63 : vector<1x128xf32> to vector<128xf32>
    %65 = vector.shape_cast %64 : vector<128xf32> to vector<1x1x128xf32>
    %66 = vector.broadcast %65 : vector<1x1x128xf32> to vector<8x5x128xf32>
    %67 = arith.mulf %62, %66 : vector<8x5x128xf32>
    %cst_21 = arith.constant dense<0.000000e+00> : vector<8x5xf32>
    %68 = vector.multi_reduction <add>, %67, %cst_21 [2] : vector<8x5x128xf32> to vector<8x5xf32>
    %69 = arith.addf %61, %68 : vector<8x5xf32>
    %70 = vector.extract_strided_slice %0 {offsets = [0, 1, 0], sizes = [8, 5, 128], strides = [1, 1, 1]} : vector<8x8x128xf32> to vector<8x5x128xf32>
    %71 = vector.extract_strided_slice %60 {offsets = [1, 0], sizes = [1, 128], strides = [1, 1]} : vector<4x128xf32> to vector<1x128xf32>
    %72 = vector.shape_cast %71 : vector<1x128xf32> to vector<128xf32>
    %73 = vector.shape_cast %72 : vector<128xf32> to vector<1x1x128xf32>
    %74 = vector.broadcast %73 : vector<1x1x128xf32> to vector<8x5x128xf32>
    %75 = arith.mulf %70, %74 : vector<8x5x128xf32>
    %cst_22 = arith.constant dense<0.000000e+00> : vector<8x5xf32>
    %76 = vector.multi_reduction <add>, %75, %cst_22 [2] : vector<8x5x128xf32> to vector<8x5xf32>
    %77 = arith.addf %69, %76 : vector<8x5xf32>
    %78 = vector.extract_strided_slice %0 {offsets = [0, 2, 0], sizes = [8, 5, 128], strides = [1, 1, 1]} : vector<8x8x128xf32> to vector<8x5x128xf32>
    %79 = vector.extract_strided_slice %60 {offsets = [2, 0], sizes = [1, 128], strides = [1, 1]} : vector<4x128xf32> to vector<1x128xf32>
    %80 = vector.shape_cast %79 : vector<1x128xf32> to vector<128xf32>
    %81 = vector.shape_cast %80 : vector<128xf32> to vector<1x1x128xf32>
    %82 = vector.broadcast %81 : vector<1x1x128xf32> to vector<8x5x128xf32>
    %83 = arith.mulf %78, %82 : vector<8x5x128xf32>
    %cst_23 = arith.constant dense<0.000000e+00> : vector<8x5xf32>
    %84 = vector.multi_reduction <add>, %83, %cst_23 [2] : vector<8x5x128xf32> to vector<8x5xf32>
    %85 = arith.addf %77, %84 : vector<8x5xf32>
    %86 = vector.extract_strided_slice %0 {offsets = [0, 3, 0], sizes = [8, 5, 128], strides = [1, 1, 1]} : vector<8x8x128xf32> to vector<8x5x128xf32>
    %87 = vector.extract_strided_slice %60 {offsets = [3, 0], sizes = [1, 128], strides = [1, 1]} : vector<4x128xf32> to vector<1x128xf32>
    %88 = vector.shape_cast %87 : vector<1x128xf32> to vector<128xf32>
    %89 = vector.shape_cast %88 : vector<128xf32> to vector<1x1x128xf32>
    %90 = vector.broadcast %89 : vector<1x1x128xf32> to vector<8x5x128xf32>
    %91 = arith.mulf %86, %90 : vector<8x5x128xf32>
    %cst_24 = arith.constant dense<0.000000e+00> : vector<8x5xf32>
    %92 = vector.multi_reduction <add>, %91, %cst_24 [2] : vector<8x5x128xf32> to vector<8x5xf32>
    %93 = arith.addf %85, %92 : vector<8x5xf32>
    %94 = vector.extract_strided_slice %1 {offsets = [0, 2], sizes = [1, 1], strides = [1, 1]} : vector<1x128xf32> to vector<1x1xf32>
    %95 = vector.broadcast %94 : vector<1x1xf32> to vector<8x5xf32>
    %96 = arith.addf %93, %95 : vector<8x5xf32>
    %cst_25 = arith.constant 0.000000e+00 : f32
    %97 = vector.broadcast %cst_25 : f32 to vector<8x5xf32>
    %98 = arith.maximumf %96, %97 : vector<8x5xf32>
    %cst_26 = arith.constant dense<0xFF800000> : vector<8xf32>
    %99 = vector.multi_reduction <maximumf>, %98, %cst_26 [1] : vector<8x5xf32> to vector<8xf32>
    %100 = vector.shape_cast %99 : vector<8xf32> to vector<8x1xf32>
    %101 = tpu.iota {dimensions = array<i32: 1>} : vector<8x128xi32>
    %c0_i32 = arith.constant 0 : i32
    %102 = vector.broadcast %c0_i32 : i32 to vector<8x128xi32>
    %103 = arith.cmpi eq, %101, %102 : vector<8x128xi32>
    %cst_27 = arith.constant 0.000000e+00 : f32
    %104 = vector.shape_cast %26 : vector<8x1xf32> to vector<8x1xf32>
    %105 = vector.broadcast %104 : vector<8x1xf32> to vector<8x128xf32>
    %106 = vector.broadcast %cst_27 : f32 to vector<8x128xf32>
    %107 = arith.select %103, %105, %106 : vector<8x128xi1>, vector<8x128xf32>
    %c1_i32 = arith.constant 1 : i32
    %108 = vector.broadcast %c1_i32 : i32 to vector<8x128xi32>
    %109 = arith.cmpi eq, %101, %108 : vector<8x128xi32>
    %110 = vector.shape_cast %59 : vector<8x1xf32> to vector<8x1xf32>
    %111 = vector.broadcast %110 : vector<8x1xf32> to vector<8x128xf32>
    %112 = arith.select %109, %111, %107 : vector<8x128xi1>, vector<8x128xf32>
    %c2_i32 = arith.constant 2 : i32
    %113 = vector.broadcast %c2_i32 : i32 to vector<8x128xi32>
    %114 = arith.cmpi eq, %101, %113 : vector<8x128xi32>
    %115 = vector.shape_cast %100 : vector<8x1xf32> to vector<8x1xf32>
    %116 = vector.broadcast %115 : vector<8x1xf32> to vector<8x128xf32>
    %117 = arith.select %114, %116, %112 : vector<8x128xi1>, vector<8x128xf32>
    %c0_28 = arith.constant 0 : index
    %c0_29 = arith.constant 0 : index
    %118 = vector.load %arg6[%c0_28, %c0_29] : memref<8x128xf32, #tpu.memory_space<vmem>>, vector<8x128xf32>
    tpu.vector_store %arg6[%c0_28, %c0_29], %117 {strides = array<i32>} : memref<8x128xf32, #tpu.memory_space<vmem>>, vector<8x128xf32>,
    return
  }
  func.func @transform_0(%arg0: i32) -> (i32, i32, i32) {
    %c0_i32 = arith.constant 0 : i32
    %c0_i32_0 = arith.constant 0 : i32
    %c0_i32_1 = arith.constant 0 : i32
    %c0_i32_2 = arith.constant 0 : i32
    return %c0_i32, %c0_i32_0, %c0_i32_1 : i32, i32, i32
  }
  func.func @transform_1(%arg0: i32) -> (i32, i32) {
    %c0_i32 = arith.constant 0 : i32
    %c0_i32_0 = arith.constant 0 : i32
    %c0_i32_1 = arith.constant 0 : i32
    return %c0_i32, %c0_i32_0 : i32, i32
  }
  func.func @transform_2(%arg0: i32) -> (i32, i32) {
    %c0_i32 = arith.constant 0 : i32
    %c0_i32_0 = arith.constant 0 : i32
    %c0_i32_1 = arith.constant 0 : i32
    return %c0_i32, %c0_i32_0 : i32, i32
  }
  func.func @transform_3(%arg0: i32) -> (i32, i32) {
    %c0_i32 = arith.constant 0 : i32
    %c0_i32_0 = arith.constant 0 : i32
    %c0_i32_1 = arith.constant 0 : i32
    return %c0_i32, %c0_i32_0 : i32, i32
  }
  func.func @transform_4(%arg0: i32) -> (i32, i32) {
    %c0_i32 = arith.constant 0 : i32
    %c0_i32_0 = arith.constant 0 : i32
    %c0_i32_1 = arith.constant 0 : i32
    return %c0_i32, %c0_i32_0 : i32, i32
  }
  func.func @transform_5(%arg0: i32) -> (i32, i32) {
    %c0_i32 = arith.constant 0 : i32
    %c0_i32_0 = arith.constant 0 : i32
    %c0_i32_1 = arith.constant 0 : i32
    return %c0_i32, %c0_i32_0 : i32, i32
  }
}

</mosaic_0001>

<bundles_post_ra>
// kernel: tpu_custom_call.1
= control target key start
LH: loop header
LB: loop body
LE: loop exit
PB: predicated region body
PF: predicated region fallthrough
CT: control target
= control target key end

     0   :  { %10 = vsyncpa [#allocation3], 0  ;;  %s1388_s0 = inlined_call_operand.hbm [shape: f32[8,8,128], index: 0, kind: input, shape index: {}]   ;;  %s1389_s1 = inlined_call_operand.hbm [shape: f32[2,128], index: 1, kind: input, shape index: {}]   ;;  %s1390_s2 = inlined_call_operand.hbm [shape: f32[3,128], index: 2, kind: input, shape index: {}]   ;;  %s1391_s3 = inlined_call_operand.hbm [shape: f32[4,128], index: 3, kind: input, shape index: {}]   ;;  %s1392_s4 = inlined_call_operand.vmem [shape: f32[1,128], index: 4, kind: input, shape index: {}]   ;;  %s1393_s5 = inlined_call_operand.hbm [shape: f32[8,128], index: 5, kind: output, shape index: {}]  }
   0x1   :  { %11 = vsyncpa [#allocation6], 0 }
   0x2   :  { %12 = vsyncpa [#allocation9], 0  ;;  %s32_s20 = sshll.u32 %s1389_s1, 4  ;;  %s33_s20 = int_to_ptr.hbm [resolvable:$true] %s32_s20 }
   0x3   :  { %13 = vsyncpa [#allocation4], 0  ;;  %s1010_s21 = smov [#allocation5]   ;;  %s18_s25 = sshll.u32 %s1388_s0, 4  ;;  %s19_s25 = int_to_ptr.hbm [resolvable:$true] %s18_s25 }
   0x4   :  { %s34_s22 = sshll.u32 %s1010_s21, 4  ;;  %s1011_s26 = smov [#allocation2]   ;;  %s35_s22 = int_to_ptr.vmem [resolvable:$true] %s34_s22 }
   0x5   :  { %37 = dma.hbm_to_vmem [thread:$0]  %s33_s20, 32, %s35_s22, [#allocation6]  }
   0x6   :  { %s20_s27 = sshll.u32 %s1011_s26, 4  ;;  %s1012_s28 = smov 128   ;;  %s21_s27 = int_to_ptr.vmem [resolvable:$true] %s20_s27 }
   0x7   :  { %s1013_s29 = smov 8   ;;  %s43_s1 = sshll.u32 %s1390_s2, 4  ;;  %s44_s1 = int_to_ptr.hbm [resolvable:$true] %s43_s1 }
   0x8   :  { %26 = dma.hbm_to_vmem [thread:$0]  %s19_s25, 1024, %s21_s27, [#allocation3], %s1012_s28, %s1012_s28, %s1013_s29  }
   0x9   :  { %s1014_s7 = smov [#allocation7]   ;;  %s54_s0 = sshll.u32 %s1391_s3, 4  ;;  %s55_s0 = int_to_ptr.hbm [resolvable:$true] %s54_s0 }
   0xa   :  { %s45_s8 = sshll.u32 %s1014_s7, 4  ;;  %s1015_s11 = smov [#allocation8]   ;;  %s46_s8 = int_to_ptr.vmem [resolvable:$true] %s45_s8 }
   0xb   :  { %48 = dma.hbm_to_vmem [thread:$0]  %s44_s1, 64, %s46_s8, [#allocation6]  }
   0xc   :  { %s56_s12 = sshll.u32 %s1015_s11, 4  ;;  %s57_s12 = int_to_ptr.vmem [resolvable:$true] %s56_s12 }
   0xd   :  { %59 = dma.hbm_to_vmem [thread:$0]  %s55_s0, 64, %s57_s12, [#allocation9]  }
   0xe   :  { %1002 = dma.done.wait [#allocation3], 1024  }
   0xf   :  { %1003 = vsyncadd [#allocation3], 4294966272 }
  0x10   :  { %1004 = dma.done.wait [#allocation6], 96  }
  0x11   :  { %1005 = vsyncadd [#allocation6], 4294967200 }
  0x12   :  { %1006 = dma.done.wait [#allocation9], 64  }
  0x13   :  { %1007 = vsyncadd [#allocation9], 4294967232  ;;  %v1062_v0 = vld [vmem:[#allocation2 + $0x20] sm:$0xff]  ;;  %v1064_v2 = vld [vmem:[#allocation2 + $0x10] sm:$0xff]  ;;  %vm97_vm0 = vcmask 1046528   ;;  %vm139_vm1 = vcmask 1047553  }
  0x14   :  { %v87_v1 = vld [vmem:[#allocation5] sm:$0x3]  ;;  %v1071_v8 = vld [vmem:[#allocation2 + $0x28] sm:$0xff]  ;;  %v1073_v9 = vld [vmem:[#allocation2 + $0x18] sm:$0xff]  ;;  %vm289_vm2 = vcmask 1045504   ;;  %vm331_vm3 = vcmask 1046529  }
  0x15   :  { %v88_v3 = vperm.slane %v87_v1, 0  ;;  %v1066_v4 = vld [vmem:[#allocation2] sm:$0xff]  ;;  %v1078_v13 = vld [vmem:[#allocation2 + $0x8] sm:$0xff]  ;;  %v130_v19 = vperm.slane %v87_v1, 1  ;;  %v1086_v21 = vld [vmem:[#allocation2 + $0x38] sm:$0xff]  ;;  %vm397_vm4 = vcmask 1047554  }
  0x16   :  { %v1088_v22 = vld [vmem:[#allocation2 + $0x30] sm:$0xff]  ;;  %v279_v38 = vld [vmem:[#allocation7] sm:$0x7]  ;;  %vm536_vm5 = vcmask 1044480   ;;  %vm578_vm6 = vcmask 1045505   ;;  %vm260_vm7 = vcmask 1041409  }
  0x17   :  { %v93_v5 = vmul.f32 %v88_v3, %v1062_v0  ;;  %v91_v6 = vmul.f32 %v88_v3, %v1064_v2  ;;  %v89_v7 = vmul.f32 %v88_v3, %v1066_v4  ;;  %v94_v14 = vmul.f32 %v88_v3, %v1071_v8  ;;  %s853_s16 = sshll.u32 %s1393_s5, 4  ;;  %s854_s16 = int_to_ptr.hbm [resolvable:$true] %s853_s16 }
  0x18   :  { %v92_v15 = vmul.f32 %v88_v3, %v1073_v9  ;;  %v90_v16 = vmul.f32 %v88_v3, %v1078_v13  ;;  %v96_v23 = vmul.f32 %v88_v3, %v1086_v21  ;;  %v131_v24 = vmul.f32 %v130_v19, %v1066_v4 }
  0x19   :  { %v110_v10 = vsel %vm97_vm0, %v93_v5, 0.0  ;;  %v104_v11 = vsel %vm97_vm0, %v91_v6, 0.0  ;;  %v98_v12 = vsel %vm97_vm0, %v89_v7, 0.0  ;;  %v113_v17 = vsel %vm97_vm0, %v94_v14, 0.0 }
  0x1a   :  { %111 = vadd.xlane.f32.xlu2 %v110_v10  ;;  %105 = vadd.xlane.f32.xlu1 %v104_v11  ;;  %v107_v18 = vsel %vm97_vm0, %v92_v15, 0.0  ;;  %v101_v20 = vsel %vm97_vm0, %v90_v16, 0.0  ;;  %v95_v25 = vmul.f32 %v88_v3, %v1088_v22  ;;  %v119_v26 = vsel %vm97_vm0, %v96_v23, 0.0 }
  0x1b   :  { %99 = vadd.xlane.f32.xlu0 %v98_v12  ;;  %v140_v27 = vsel %vm139_vm1, %v131_v24, 0.0  ;;  %v133_v29 = vmul.f32 %v130_v19, %v1064_v2  ;;  %v134_v30 = vmul.f32 %v130_v19, %v1073_v9  ;;  %v132_v31 = vmul.f32 %v130_v19, %v1078_v13 }
  0x1c   :  { %v116_v28 = vsel %vm97_vm0, %v95_v25, 0.0  ;;  %v136_v35 = vmul.f32 %v130_v19, %v1071_v8  ;;  %v137_v36 = vmul.f32 %v130_v19, %v1088_v22  ;;  %v135_v37 = vmul.f32 %v130_v19, %v1062_v0 }
  0x1d   :  { %v146_v32 = vsel %vm139_vm1, %v133_v29, 0.0  ;;  %v149_v33 = vsel %vm139_vm1, %v134_v30, 0.0  ;;  %v143_v34 = vsel %vm139_vm1, %v132_v31, 0.0  ;;  %v280_v41 = vperm.slane %v279_v38, 0 }
  0x1e   :  { %v155_v39 = vsel %vm139_vm1, %v136_v35, 0.0  ;;  %v158_v40 = vsel %vm139_vm1, %v137_v36, 0.0  ;;  %v152_v42 = vsel %vm139_vm1, %v135_v37, 0.0  ;;  %v138_v45 = vmul.f32 %v130_v19, %v1086_v21 }
  0x1f   :  { %v282_v43 = vmul.f32 %v280_v41, %v1078_v13  ;;  %v281_v44 = vmul.f32 %v280_v41, %v1066_v4  ;;  %v285_v49 = vmul.f32 %v280_v41, %v1062_v0  ;;  %v283_v50 = vmul.f32 %v280_v41, %v1064_v2 }
  0x20   :  { %v161_v48 = vsel %vm139_vm1, %v138_v45, 0.0  ;;  %v284_v51 = vmul.f32 %v280_v41, %v1073_v9  ;;  %v288_v55 = vmul.f32 %v280_v41, %v1086_v21  ;;  %v286_v56 = vmul.f32 %v280_v41, %v1071_v8 }
  0x21   :  { %v293_v46 = vsel %vm289_vm2, %v282_v43, 0.0  ;;  %v290_v47 = vsel %vm289_vm2, %v281_v44, 0.0  ;;  %v302_v52 = vsel %vm289_vm2, %v285_v49, 0.0  ;;  %v296_v53 = vsel %vm289_vm2, %v283_v50, 0.0 }
  0x22   :  { %114 = vadd.xlane.f32.xlu2 %v113_v17  ;;  %108 = vadd.xlane.f32.xlu1 %v107_v18  ;;  %v299_v54 = vsel %vm289_vm2, %v284_v51, 0.0  ;;  %v287_v57 = vmul.f32 %v280_v41, %v1088_v22  ;;  %v311_v58 = vsel %vm289_vm2, %v288_v55, 0.0  ;;  %v305_v59 = vsel %vm289_vm2, %v286_v56, 0.0  ;;  %v1163_v41 = vld [vmem:[%s1392_s4] ss:$0 sm:$0xff]  ;;  %s1019_s4 = smov [#allocation10]  }
  0x23   :  { %102 = vadd.xlane.f32.xlu0 %v101_v20  ;;  %v322_v60 = vperm.slane %v279_v38, 1  ;;  %v388_v15 = vperm.slane %v279_v38, 2  ;;  %v1016_v20 = vmov 1   ;;  %vm644_vm8 = vcmask 1046530   ;;  %s851_s13 = sshll.u32 %s1019_s4, 4  ;;  %s852_s13 = int_to_ptr.vmem [resolvable:$true] %s851_s13 }
  0x24   :  { %v308_v61 = vsel %vm289_vm2, %v287_v57, 0.0  ;;  %877 = vset.pattern.permute.xlu0 %v1016_v20  ;;  %vm262_vm9 = vcmask 1042434   ;;  %vm264_vm10 = vcmask 1043459   ;;  %vm266_vm11 = vcmask 1044484  }
  0x25   :  { %v325_v62 = vmul.f32 %v322_v60, %v1064_v2  ;;  %v323_v63 = vmul.f32 %v322_v60, %v1066_v4  ;;  %v324_v1 = vmul.f32 %v322_v60, %v1078_v13  ;;  %v328_v7 = vmul.f32 %v322_v60, %v1071_v8 }
  0x26   :  { %v326_v10 = vmul.f32 %v322_v60, %v1073_v9  ;;  %v327_v11 = vmul.f32 %v322_v60, %v1062_v0  ;;  %v389_v17 = vmul.f32 %v388_v15, %v1066_v4  ;;  %v329_v18 = vmul.f32 %v322_v60, %v1088_v22 }
  0x27   :  { %v338_v3 = vsel %vm331_vm3, %v325_v62, 0.0  ;;  %v332_v5 = vsel %vm331_vm3, %v323_v63, 0.0  ;;  %v335_v6 = vsel %vm331_vm3, %v324_v1, 0.0  ;;  %v347_v12 = vsel %vm331_vm3, %v328_v7, 0.0 }
  0x28   :  { %v341_v14 = vsel %vm331_vm3, %v326_v10, 0.0  ;;  %v344_v16 = vsel %vm331_vm3, %v327_v11, 0.0  ;;  %v330_v19 = vmul.f32 %v322_v60, %v1086_v21  ;;  %v398_v23 = vsel %vm397_vm4, %v389_v17, 0.0 }
  0x29   :  { %v350_v24 = vsel %vm331_vm3, %v329_v18, 0.0  ;;  %v394_v35 = vmul.f32 %v388_v15, %v1071_v8  ;;  %vm268_vm12 = vcmask 1045509   ;;  %vm270_vm13 = vcmask 1046534  }
  0x2a   :  { %120 = vadd.xlane.f32.xlu1 %v119_v26  ;;  %141 = vadd.xlane.f32.xlu2 %v140_v27  ;;  %v353_v25 = vsel %vm331_vm3, %v330_v19, 0.0  ;;  %v392_v26 = vmul.f32 %v388_v15, %v1073_v9  ;;  %v390_v27 = vmul.f32 %v388_v15, %v1078_v13  ;;  %vm272_vm14 = vcmask 1047559  }
  0x2b   :  { %117 = vadd.xlane.f32.xlu0 %v116_v28  ;;  %v391_v28 = vmul.f32 %v388_v15, %v1064_v2  ;;  %v413_v38 = vsel %vm397_vm4, %v394_v35, 0.0  ;;  %vm275_vm15 = vcmask 56320   ;;  %vm710_vm0 = vcmask 1047555  }
  0x2c   :  { %v407_v29 = vsel %vm397_vm4, %v392_v26, 0.0  ;;  %v401_v30 = vsel %vm397_vm4, %v390_v27, 0.0  ;;  %vm522_vm1 = vcmask 48128  }
  0x2d   :  { %v404_v31 = vsel %vm397_vm4, %v391_v28, 0.0 }
  0x32   :  { %147 = vadd.xlane.f32.xlu1 %v146_v32  ;;  %150 = vadd.xlane.f32.xlu2 %v149_v33  ;;  %v1017_v32 = vmov 0   ;;  %v395_v33 = vmul.f32 %v388_v15, %v1088_v22 }
  0x33   :  { %144 = vadd.xlane.f32.xlu0 %v143_v34  ;;  %875 = vset.pattern.permute.xlu1 %v1017_v32  ;;  %v393_v34 = vmul.f32 %v388_v15, %v1062_v0 }
  0x34   :  { %876 = vset.pattern.permute.xlu2 %v1017_v32  ;;  %v416_v36 = vsel %vm397_vm4, %v395_v33, 0.0 }
  0x35   :  { %v410_v37 = vsel %vm397_vm4, %v393_v34, 0.0 }
  0x3a   :  { %156 = vadd.xlane.f32.xlu1 %v155_v39  ;;  %159 = vadd.xlane.f32.xlu2 %v158_v40  ;;  %v396_v39 = vmul.f32 %v388_v15, %v1086_v21 }
  0x3b   :  { %153 = vadd.xlane.f32.xlu0 %v152_v42 }
  0x3c   :  { %v419_v40 = vsel %vm397_vm4, %v396_v39, 0.0  ;;  %vm835_vm4 = vcmask 39936  }
  0x42   :  { %294 = vadd.xlane.f32.xlu1 %v293_v46  ;;  %291 = vadd.xlane.f32.xlu2 %v290_v47 }
  0x43   :  { %162 = vadd.xlane.f32.xlu0 %v161_v48 }
  0x4a   :  { %303 = vadd.xlane.f32.xlu1 %v302_v52  ;;  %297 = vadd.xlane.f32.xlu2 %v296_v53 }
  0x4b   :  { %300 = vadd.xlane.f32.xlu0 %v299_v54 }
  0x52   :  { %312 = vadd.xlane.f32.xlu1 %v311_v58  ;;  %306 = vadd.xlane.f32.xlu2 %v305_v59 }
  0x53   :  { %309 = vadd.xlane.f32.xlu0 %v308_v61 }
  0x5a   :  { %339 = vadd.xlane.f32.xlu1 %v338_v3  ;;  %333 = vadd.xlane.f32.xlu2 %v332_v5 }
  0x5b   :  { %336 = vadd.xlane.f32.xlu0 %v335_v6 }
  0x62   :  { %348 = vadd.xlane.f32.xlu1 %v347_v12  ;;  %342 = vadd.xlane.f32.xlu2 %v341_v14 }
  0x63   :  { %345 = vadd.xlane.f32.xlu0 %v344_v16 }
  0x6a   :  { %399 = vadd.xlane.f32.xlu1 %v398_v23  ;;  %351 = vadd.xlane.f32.xlu2 %v350_v24 }
  0x6b   :  { %354 = vadd.xlane.f32.xlu0 %v353_v25 }
  0x72   :  { %408 = vadd.xlane.f32.xlu1 %v407_v29  ;;  %402 = vadd.xlane.f32.xlu2 %v401_v30 }
  0x73   :  { %405 = vadd.xlane.f32.xlu0 %v404_v31 }
  0x7a   :  { %417 = vadd.xlane.f32.xlu1 %v416_v36  ;;  %411 = vadd.xlane.f32.xlu2 %v410_v37 }
  0x7b   :  { %414 = vadd.xlane.f32.xlu0 %v413_v38 }
  0x82   :  { %420 = vadd.xlane.f32.xlu2 %v419_v40 }
  0x8d   :  { %v112_v42 = vpop.xlane.xlu2 %111  ;;  %v106_v43 = vpop.xlane.xlu1 %105 }
  0x8e   :  { %v100_v44 = vpop.xlane.xlu0 %99 }
  0x8f   :  { %455 = vperm.xlu0 %877, %v1163_v41  }
  0x93   :  { %199 = vperm.xlu1 %875, %v1163_v41  }
  0x95   :  { %v115_v45 = vpop.xlane.xlu2 %114  ;;  %v109_v46 = vpop.xlane.xlu1 %108 }
  0x96   :  { %v103_v47 = vpop.xlane.xlu0 %102 }
  0x97   :  { %878 = vset.pattern.permute.xlu0 %v1017_v32 }
  0x9d   :  { %v121_v48 = vpop.xlane.xlu1 %120  ;;  %v142_v49 = vpop.xlane.xlu2 %141 }
  0x9e   :  { %v118_v50 = vpop.xlane.xlu0 %117  ;;  %v172_v36 = vrot.slane %v142_v49, 1 }
  0xa0   :  { %v188_v39 = vadd.f32 %v172_v36, %v100_v44 }
  0xa5   :  { %v148_v51 = vpop.xlane.xlu1 %147  ;;  %v151_v52 = vpop.xlane.xlu2 %150 }
  0xa6   :  { %v174_v53 = vrot.slane %v148_v51, 1  ;;  %v145_v54 = vpop.xlane.xlu0 %144  ;;  %v175_v37 = vrot.slane %v151_v52, 1 }
  0xa7   :  { %v173_v55 = vrot.slane %v145_v54, 1 }
  0xa8   :  { %v190_v56 = vadd.f32 %v174_v53, %v106_v43  ;;  %v191_v40 = vadd.f32 %v175_v37, %v109_v46 }
  0xa9   :  { %v189_v57 = vadd.f32 %v173_v55, %v103_v47 }
  0xad   :  { %v157_v58 = vpop.xlane.xlu1 %156  ;;  %v160_v59 = vpop.xlane.xlu2 %159 }
  0xae   :  { %v177_v60 = vrot.slane %v157_v58, 1  ;;  %v178_v61 = vrot.slane %v160_v59, 1  ;;  %v154_v62 = vpop.xlane.xlu0 %153 }
  0xaf   :  { %v176_v63 = vrot.slane %v154_v62, 1 }
  0xb0   :  { %v193_v1 = vadd.f32 %v177_v60, %v115_v45  ;;  %v1168_v3 = vadd.f32 %v178_v61, %v118_v50 }
  0xb1   :  { %v192_v5 = vadd.f32 %v176_v63, %v112_v42 }
  0xb5   :  { %v1170_v6 = vpop.xlane.xlu1 %294  ;;  %v292_v14 = vpop.xlane.xlu2 %291 }
  0xb6   :  { %v163_v7 = vpop.xlane.xlu0 %162 }
  0xb7   :  { %v179_v10 = vrot.slane %v163_v7, 1 }
  0xb9   :  { %v195_v11 = vadd.f32 %v179_v10, %v121_v48 }
  0xbd   :  { %v1172_v12 = vpop.xlane.xlu1 %303  ;;  %v1178_v17 = vpop.xlane.xlu2 %297 }
  0xbe   :  { %v1176_v16 = vpop.xlane.xlu0 %300 }
  0xc5   :  { %v1174_v15 = vpop.xlane.xlu1 %312  ;;  %v307_v24 = vpop.xlane.xlu2 %306 }
  0xc6   :  { %v310_v19 = vpop.xlane.xlu0 %309 }
  0xcd   :  { %v1180_v18 = vpop.xlane.xlu1 %339  ;;  %v334_v30 = vpop.xlane.xlu2 %333 }
  0xce   :  { %v337_v26 = vpop.xlane.xlu0 %336  ;;  %v364_v63 = vrot.slane %v334_v30, 1 }
  0xd0   :  { %v380_v10 = vadd.f32 %v364_v63, %v292_v14 }
  0xd5   :  { %v349_v20 = vpop.xlane.xlu1 %348  ;;  %v1190_v34 = vpop.xlane.xlu2 %342 }
  0xd6   :  { %v369_v23 = vrot.slane %v349_v20, 1  ;;  %v1184_v27 = vpop.xlane.xlu0 %345 }
  0xd8   :  { %v1182_v25 = vadd.f32 %v369_v23, %v307_v24 }
  0xdd   :  { %v400_v28 = vpop.xlane.xlu1 %399  ;;  %v352_v42 = vpop.xlane.xlu2 %351 }
  0xde   :  { %v1186_v29 = vpop.xlane.xlu0 %354  ;;  %v370_v43 = vrot.slane %v352_v42, 1 }
  0xe0   :  { %v386_v58 = vadd.f32 %v370_v43, %v310_v19  ;;  %v430_v19 = vrot.slane %v400_v28, 2 }
  0xe5   :  { %v1188_v31 = vpop.xlane.xlu1 %408  ;;  %v403_v20 = vpop.xlane.xlu2 %402 }
  0xe6   :  { %v406_v33 = vpop.xlane.xlu0 %405  ;;  %v431_v37 = vrot.slane %v403_v20, 2 }
  0xed   :  { %v418_v35 = vpop.xlane.xlu1 %417 }
  0xee   :  { %v1192_v38 = vpop.xlane.xlu0 %414  ;;  %v436_v51 = vrot.slane %v418_v35, 2  ;;  %v446_v35 = vadd.f32 %v430_v19, %v380_v10 }
  0xf0   :  { %v452_v49 = vadd.f32 %v436_v51, %v386_v58 }
 0x101   :  { %v1194_v59 = vpop.permute.xlu0 %455 }
 0x102   :  { %v464_v46 = vadd.f32 %v1194_v59, %v452_v49  ;;  %v458_v30 = vadd.f32 %v1194_v59, %v446_v35 }
 0x104   :  { %v472_v62 = vmax.f32 %v464_v46, 0.0  ;;  %v466_v28 = vmax.f32 %v458_v30, 0.0 }
 0x105   :  { %v200_v45 = vpop.permute.xlu1 %199 }
 0x106   :  { %v205_v47 = vadd.f32 %v200_v45, %v191_v40  ;;  %v202_v48 = vadd.f32 %v200_v45, %v188_v39  ;;  %v203_v50 = vadd.f32 %v200_v45, %v189_v57  ;;  %v207_v52 = vadd.f32 %v200_v45, %v193_v1  ;;  %v412_v40 = vpop.xlane.xlu2 %411 }
 0x107   :  { %v204_v44 = vadd.f32 %v200_v45, %v190_v56  ;;  %v206_v57 = vadd.f32 %v200_v45, %v192_v5  ;;  %v209_v7 = vadd.f32 %v200_v45, %v195_v11  ;;  %v366_v56 = vrot.slane %v1180_v18, 1 }
 0x108   :  { %v213_v53 = vmax.f32 %v205_v47, 0.0  ;;  %v210_v54 = vmax.f32 %v202_v48, 0.0  ;;  %v211_v55 = vmax.f32 %v203_v50, 0.0  ;;  %v215_v60 = vmax.f32 %v207_v52, 0.0 }
 0x109   :  { %v212_v61 = vmax.f32 %v204_v44, 0.0  ;;  %v214_v23 = vmax.f32 %v206_v57, 0.0  ;;  %v217_v24 = vmax.f32 %v209_v7, 0.0  ;;  %v365_v1 = vrot.slane %v337_v26, 1 }
 0x10a   :  { %236 = vperm.xlu1 %875, %v213_v53   ;;  %227 = vperm.xlu2 %876, %v210_v54   ;;  %v208_v36 = vadd.f32 %v200_v45, %v1168_v3  ;;  %v432_v39 = vrot.slane %v406_v33, 2  ;;  %v382_v5 = vadd.f32 %v366_v56, %v1178_v17  ;;  %v367_v18 = vrot.slane %v1190_v34, 1 }
 0x10b   :  { %230 = vperm.xlu0 %878, %v211_v55   ;;  %v381_v11 = vadd.f32 %v365_v1, %v1170_v6  ;;  %v368_v26 = vrot.slane %v1184_v27, 1  ;;  %v433_v33 = vrot.slane %v1188_v31, 2  ;;  %v434_v17 = vrot.slane %v412_v40, 2 }
 0x10c   :  { %v216_v14 = vmax.f32 %v208_v36, 0.0  ;;  %v448_v43 = vadd.f32 %v432_v39, %v382_v5  ;;  %v383_v6 = vadd.f32 %v367_v18, %v1176_v16  ;;  %v371_v27 = vrot.slane %v1186_v29, 1 }
 0x10d   :  { %v447_v42 = vadd.f32 %v431_v37, %v381_v11  ;;  %v384_v47 = vadd.f32 %v368_v26, %v1172_v12  ;;  %v435_v31 = vrot.slane %v1192_v38, 2 }
 0x10e   :  { %v460_v45 = vadd.f32 %v1194_v59, %v448_v43  ;;  %v449_v51 = vadd.f32 %v433_v33, %v383_v6  ;;  %v421_v34 = vpop.xlane.xlu2 %420  ;;  %v387_v16 = vadd.f32 %v371_v27, %v1174_v15 }
 0x10f   :  { %v459_v3 = vadd.f32 %v1194_v59, %v447_v42  ;;  %v450_v53 = vadd.f32 %v434_v17, %v384_v47  ;;  %v437_v58 = vrot.slane %v421_v34, 2  ;;  %v451_v52 = vadd.f32 %v435_v31, %v1182_v25 }
 0x110   :  { %v468_v50 = vmax.f32 %v460_v45, 0.0  ;;  %v461_v54 = vadd.f32 %v1194_v59, %v449_v51 }
 0x111   :  { %v467_v48 = vmax.f32 %v459_v3, 0.0  ;;  %v462_v55 = vadd.f32 %v1194_v59, %v450_v53  ;;  %v453_v44 = vadd.f32 %v437_v58, %v387_v16  ;;  %v463_v46 = vadd.f32 %v1194_v59, %v451_v52 }
 0x112   :  { %242 = vperm.xlu1 %875, %v215_v60   ;;  %233 = vperm.xlu2 %876, %v212_v61   ;;  %v469_v49 = vmax.f32 %v461_v54, 0.0 }
 0x113   :  { %501 = vperm.xlu0 %878, %v472_v62   ;;  %v470_v12 = vmax.f32 %v462_v55, 0.0  ;;  %v465_v29 = vadd.f32 %v1194_v59, %v453_v44  ;;  %v471_v60 = vmax.f32 %v463_v46, 0.0  ;;  %v526_v62 = vld [vmem:[#allocation8] sm:$0xf] }
 0x114   :  { %v1217_v38 = vperm.slane %v526_v62, 0  ;;  %v1228_v19 = vperm.slane %v526_v62, 1  ;;  %v1233_v56 = vperm.slane %v526_v62, 2  ;;  %v1252_v47 = vperm.slane %v526_v62, 3 }
 0x115   :  { %v473_v61 = vmax.f32 %v465_v29, 0.0 }
 0x116   :  { %v528_v15 = vmul.f32 %v1217_v38, %v1066_v4  ;;  %v531_v63 = vmul.f32 %v1217_v38, %v1073_v9  ;;  %v534_v7 = vmul.f32 %v1217_v38, %v1088_v22  ;;  %v636_v37 = vmul.f32 %v1233_v56, %v1066_v4 }
 0x117   :  { %v638_v26 = vmul.f32 %v1233_v56, %v1064_v2  ;;  %v702_v27 = vmul.f32 %v1252_v47, %v1066_v4  ;;  %v640_v52 = vmul.f32 %v1233_v56, %v1062_v0  ;;  %v533_v29 = vmul.f32 %v1217_v38, %v1071_v8 }
 0x118   :  { %v537_v25 = vsel %vm536_vm5, %v528_v15, 0.0  ;;  %v546_v57 = vsel %vm536_vm5, %v531_v63, 0.0  ;;  %v555_v10 = vsel %vm536_vm5, %v534_v7, 0.0  ;;  %v641_v62 = vmul.f32 %v1233_v56, %v1071_v8 }
 0x119   :  { %v651_v6 = vsel %vm644_vm8, %v638_v26, 0.0  ;;  %v711_v58 = vsel %vm710_vm0, %v702_v27, 0.0  ;;  %v657_v46 = vsel %vm644_vm8, %v640_v52, 0.0  ;;  %v552_v15 = vsel %vm536_vm5, %v533_v29, 0.0 }
 0x11a   :  { %239 = vperm.xlu2 %876, %v214_v23   ;;  %248 = vperm.xlu1 %875, %v217_v24   ;;  %v571_v23 = vmul.f32 %v1228_v19, %v1078_v13  ;;  %v250_v24 = vlaneseq  ;;  %v570_v7 = vmul.f32 %v1228_v19, %v1066_v4 }
 0x11c   :  { %v582_v35 = vsel %vm578_vm6, %v571_v23, 0.0  ;;  %v1235_v1 = vand.u32 127, %v250_v24 }
 0x11e   :  { %vm839_vm2 = vcmp.eq.s32.totalorder %v1235_v1, 0  ;;  %vm841_vm3 = vcmp.eq.s32.totalorder %v1235_v1, 1 }
 0x122   :  { %245 = vperm.xlu2 %876, %v216_v14   ;;  %483 = vperm.xlu1 %875, %v466_v28   ;;  %v645_v28 = vsel %vm644_vm8, %v636_v37, 0.0  ;;  %v579_v37 = vsel %vm578_vm6, %v570_v7, 0.0  ;;  %v705_v7 = vmul.f32 %v1252_v47, %v1073_v9 }
 0x12a   :  { %486 = vperm.xlu2 %876, %v467_v48   ;;  %489 = vperm.xlu1 %875, %v468_v50  }
 0x132   :  { %492 = vperm.xlu2 %876, %v469_v49   ;;  %495 = vperm.xlu1 %875, %v470_v12   ;;  %v529_v49 = vmul.f32 %v1217_v38, %v1078_v13 }
 0x134   :  { %v540_v44 = vsel %vm536_vm5, %v529_v49, 0.0 }
 0x13a   :  { %498 = vperm.xlu2 %876, %v471_v60   ;;  %504 = vperm.xlu1 %875, %v473_v61  }
 0x164   :  { %538 = vadd.xlane.f32.xlu1 %v537_v25  ;;  %v228_v59 = vpop.permute.xlu2 %227 }
 0x165   :  { %v252_v11 = vperm.slane %v228_v59, %v1235_v1  ;;  %v660_v59 = vsel %vm644_vm8, %v641_v62, 0.0  ;;  %v707_v62 = vmul.f32 %v1252_v47, %v1071_v8 }
 0x16c   :  { %547 = vadd.xlane.f32.xlu1 %v546_v57  ;;  %v234_v20 = vpop.permute.xlu2 %233 }
 0x16d   :  { %v254_v40 = vperm.slane %v234_v20, %v1235_v1 }
 0x174   :  { %556 = vadd.xlane.f32.xlu1 %v555_v10  ;;  %v240_v39 = vpop.permute.xlu2 %239 }
 0x175   :  { %v256_v33 = vperm.slane %v240_v39, %v1235_v1 }
 0x17c   :  { %v237_v36 = vpop.permute.xlu1 %236  ;;  %583 = vadd.xlane.f32.xlu1 %v582_v35  ;;  %v246_v17 = vpop.permute.xlu2 %245 }
 0x17d   :  { %v231_v30 = vpop.permute.xlu0 %230  ;;  %v255_v18 = vperm.slane %v237_v36, %v1235_v1  ;;  %v258_v51 = vperm.slane %v246_v17, %v1235_v1  ;;  %v706_v36 = vmul.f32 %v1252_v47, %v1062_v0  ;;  %v574_v17 = vmul.f32 %v1228_v19, %v1062_v0 }
 0x17e   :  { %v253_v5 = vperm.slane %v231_v30, %v1235_v1 }
 0x180   :  { %v261_v14 = vsel %vm260_vm7, %v253_v5, %v252_v11 }
 0x181   :  { %v263_v42 = vsel %vm262_vm9, %v254_v40, %v261_v14  ;;  %v723_v14 = vsel %vm710_vm0, %v706_v36, 0.0 }
 0x182   :  { %v265_v45 = vsel %vm264_vm10, %v255_v18, %v263_v42 }
 0x183   :  { %v267_v48 = vsel %vm266_vm11, %v256_v33, %v265_v45 }
 0x184   :  { %v243_v43 = vpop.permute.xlu1 %242  ;;  %646 = vadd.xlane.f32.xlu1 %v645_v28  ;;  %v487_v16 = vpop.permute.xlu2 %486  ;;  %v573_v28 = vmul.f32 %v1228_v19, %v1073_v9 }
 0x185   :  { %v257_v3 = vperm.slane %v243_v43, %v1235_v1  ;;  %v507_v57 = vperm.slane %v487_v16, %v1235_v1  ;;  %v502_v5 = vpop.permute.xlu0 %501 }
 0x186   :  { %v512_v42 = vperm.slane %v502_v5, %v1235_v1  ;;  %v588_v26 = vsel %vm578_vm6, %v573_v28, 0.0 }
 0x187   :  { %v269_v50 = vsel %vm268_vm12, %v257_v3, %v267_v48  ;;  %v591_v48 = vsel %vm578_vm6, %v574_v17, 0.0 }
 0x188   :  { %v271_v54 = vsel %vm270_vm13, %v258_v51, %v269_v50  ;;  %v708_v51 = vmul.f32 %v1252_v47, %v1088_v22 }
 0x18a   :  { %v729_v27 = vsel %vm710_vm0, %v708_v51, 0.0 }
 0x18c   :  { %v249_v53 = vpop.permute.xlu1 %248  ;;  %652 = vadd.xlane.f32.xlu1 %v651_v6  ;;  %v493_v60 = vpop.permute.xlu2 %492  ;;  %v530_v6 = vmul.f32 %v1217_v38, %v1064_v2 }
 0x18d   :  { %v259_v34 = vperm.slane %v249_v53, %v1235_v1  ;;  %v509_v24 = vperm.slane %v493_v60, %v1235_v1  ;;  %v639_v53 = vmul.f32 %v1233_v56, %v1073_v9 }
 0x18e   :  { %v543_v50 = vsel %vm536_vm5, %v530_v6, 0.0 }
 0x18f   :  { %v273_v55 = vsel %vm272_vm14, %v259_v34, %v271_v54  ;;  %v532_v34 = vmul.f32 %v1217_v38, %v1062_v0  ;;  %v654_v54 = vsel %vm644_vm8, %v639_v53, 0.0  ;;  %v577_v0 = vmul.f32 %v1228_v19, %v1086_v21 }
 0x190   :  { %v276_v31 = vsel %vm275_vm15, %v273_v55, -inf }
 0x191   :  { %277 = vmax.xlane.f32.xlu0 %v276_v31  ;;  %v549_v55 = vsel %vm536_vm5, %v532_v34, 0.0  ;;  %v576_v31 = vmul.f32 %v1228_v19, %v1088_v22  ;;  %v600_v52 = vsel %vm578_vm6, %v577_v0, 0.0 }
 0x193   :  { %v597_v16 = vsel %vm578_vm6, %v576_v31, 0.0 }
 0x194   :  { %v484_v12 = vpop.permute.xlu1 %483  ;;  %712 = vadd.xlane.f32.xlu1 %v711_v58  ;;  %v499_v30 = vpop.permute.xlu2 %498  ;;  %v535_v58 = vmul.f32 %v1217_v38, %v1086_v21  ;;  %v642_v38 = vmul.f32 %v1233_v56, %v1088_v22  ;;  %v703_v22 = vmul.f32 %v1252_v47, %v1078_v13 }
 0x195   :  { %v506_v25 = vperm.slane %v484_v12, %v1235_v1  ;;  %v511_v11 = vperm.slane %v499_v30, %v1235_v1  ;;  %v572_v12 = vmul.f32 %v1228_v19, %v1064_v2 }
 0x196   :  { %v558_v49 = vsel %vm536_vm5, %v535_v58, 0.0  ;;  %v663_v29 = vsel %vm644_vm8, %v642_v38, 0.0  ;;  %vm843_vm5 = vcmp.eq.s32.totalorder %v1235_v1, 2 }
 0x197   :  { %v514_v10 = vsel %vm260_vm7, %v507_v57, %v506_v25  ;;  %v726_v25 = vsel %vm710_vm0, %v707_v62, 0.0  ;;  %v714_v57 = vsel %vm710_vm0, %v703_v22, 0.0 }
 0x199   :  { %541 = vadd.xlane.f32.xlu0 %v540_v44  ;;  %v585_v44 = vsel %vm578_vm6, %v572_v12, 0.0 }
 0x19c   :  { %v490_v61 = vpop.permute.xlu1 %489  ;;  %658 = vadd.xlane.f32.xlu1 %v657_v46  ;;  %v637_v46 = vmul.f32 %v1233_v56, %v1078_v13  ;;  %v720_v13 = vsel %vm710_vm0, %v705_v7, 0.0 }
 0x19d   :  { %v508_v63 = vperm.slane %v490_v61, %v1235_v1  ;;  %v575_v61 = vmul.f32 %v1228_v19, %v1071_v8  ;;  %v704_v8 = vmul.f32 %v1252_v47, %v1064_v2 }
 0x19e   :  { %v648_v60 = vsel %vm644_vm8, %v637_v46, 0.0 }
 0x19f   :  { %v515_v20 = vsel %vm262_vm9, %v508_v63, %v514_v10  ;;  %v709_v63 = vmul.f32 %v1252_v47, %v1086_v21  ;;  %v717_v19 = vsel %vm710_vm0, %v704_v8, 0.0  ;;  %v643_v10 = vmul.f32 %v1233_v56, %v1086_v21 }
 0x1a0   :  { %v516_v39 = vsel %vm264_vm10, %v509_v24, %v515_v20 }
 0x1a1   :  { %553 = vadd.xlane.f32.xlu0 %v552_v15  ;;  %v594_v15 = vsel %vm578_vm6, %v575_v61, 0.0  ;;  %v666_v20 = vsel %vm644_vm8, %v643_v10, 0.0 }
 0x1a4   :  { %v496_v23 = vpop.permute.xlu1 %495  ;;  %661 = vadd.xlane.f32.xlu1 %v660_v59  ;;  %v732_v59 = vsel %vm710_vm0, %v709_v63, 0.0 }
 0x1a5   :  { %v510_v35 = vperm.slane %v496_v23, %v1235_v1  ;;  %v1018_v23 = vmov 2  }
 0x1a6   :  { %879 = vset.pattern.permute.xlu2 %v1018_v23 }
 0x1a7   :  { %v517_v4 = vsel %vm266_vm11, %v510_v35, %v516_v39 }
 0x1a8   :  { %v518_v40 = vsel %vm268_vm12, %v511_v11, %v517_v4 }
 0x1a9   :  { %580 = vadd.xlane.f32.xlu0 %v579_v37  ;;  %v519_v3 = vsel %vm270_vm13, %v512_v42, %v518_v40 }
 0x1ac   :  { %v505_v43 = vpop.permute.xlu1 %504  ;;  %724 = vadd.xlane.f32.xlu1 %v723_v14 }
 0x1ad   :  { %v513_v18 = vperm.slane %v505_v43, %v1235_v1 }
 0x1af   :  { %v520_v45 = vsel %vm272_vm14, %v513_v18, %v519_v3 }
 0x1b0   :  { %v523_v33 = vsel %vm522_vm1, %v520_v45, -inf }
 0x1b1   :  { %589 = vadd.xlane.f32.xlu0 %v588_v26  ;;  %524 = vmax.xlane.f32.xlu2 %v523_v33 }
 0x1b4   :  { %730 = vadd.xlane.f32.xlu1 %v729_v27 }
 0x1b9   :  { %592 = vadd.xlane.f32.xlu0 %v591_v48  ;;  %544 = vadd.xlane.f32.xlu2 %v543_v50 }
 0x1c1   :  { %655 = vadd.xlane.f32.xlu0 %v654_v54  ;;  %550 = vadd.xlane.f32.xlu2 %v549_v55 }
 0x1c9   :  { %598 = vadd.xlane.f32.xlu0 %v597_v16  ;;  %559 = vadd.xlane.f32.xlu2 %v558_v49 }
 0x1d1   :  { %601 = vadd.xlane.f32.xlu0 %v600_v52  ;;  %586 = vadd.xlane.f32.xlu2 %v585_v44 }
 0x1d7   :  { %v539_v2 = vpop.xlane.xlu1 %538 }
 0x1d9   :  { %664 = vadd.xlane.f32.xlu0 %v663_v29  ;;  %649 = vadd.xlane.f32.xlu2 %v648_v60 }
 0x1df   :  { %v548_v21 = vpop.xlane.xlu1 %547 }
 0x1e1   :  { %595 = vadd.xlane.f32.xlu2 %v594_v15  ;;  %727 = vadd.xlane.f32.xlu0 %v726_v25 }
 0x1e7   :  { %v1359_v37 = vpop.xlane.xlu1 %556 }
 0x1e9   :  { %715 = vadd.xlane.f32.xlu2 %v714_v57  ;;  %733 = vadd.xlane.f32.xlu0 %v732_v59 }
 0x1f1   :  { %718 = vadd.xlane.f32.xlu2 %v717_v19 }
 0x1f9   :  { %721 = vadd.xlane.f32.xlu2 %v720_v13 }
 0x201   :  { %667 = vadd.xlane.f32.xlu2 %v666_v20 }
 0x204   :  { %v278_v24 = vpop.xlane.xlu0 %277 }
 0x205   :  { %v840_v9 = vsel %vm839_vm2, %v278_v24, 0.0 }
 0x20c   :  { %v542_v35 = vpop.xlane.xlu0 %541 }
 0x214   :  { %v554_v56 = vpop.xlane.xlu0 %553 }
 0x219   :  { %768 = vperm.xlu2 %879, %v1163_v41   ;;  %v584_v41 = vpop.xlane.xlu1 %583 }
 0x21a   :  { %v612_v27 = vrot.slane %v584_v41, 1 }
 0x21c   :  { %v581_v4 = vpop.xlane.xlu0 %580  ;;  %v628_v44 = vadd.f32 %v612_v27, %v542_v35 }
 0x21d   :  { %v611_v51 = vrot.slane %v581_v4, 1 }
 0x21f   :  { %v627_v55 = vadd.f32 %v611_v51, %v539_v2 }
 0x221   :  { %880 = vset.pattern.permute.xlu2 %v1017_v32  ;;  %v647_v28 = vpop.xlane.xlu1 %646 }
 0x222   :  { %v677_v54 = vrot.slane %v647_v28, 2 }
 0x224   :  { %v525_v47 = vpop.xlane.xlu2 %524  ;;  %v590_v11 = vpop.xlane.xlu0 %589  ;;  %v693_v38 = vadd.f32 %v677_v54, %v627_v55 }
 0x225   :  { %v1357_v36 = vsel %vm841_vm3, %v525_v47, %v840_v9  ;;  %v614_v60 = vrot.slane %v590_v11, 1 }
 0x227   :  { %v630_v10 = vadd.f32 %v614_v60, %v548_v21 }
 0x229   :  { %v653_v42 = vpop.xlane.xlu1 %652 }
 0x22a   :  { %v679_v16 = vrot.slane %v653_v42, 2 }
 0x22c   :  { %v545_v30 = vpop.xlane.xlu2 %544  ;;  %v593_v32 = vpop.xlane.xlu0 %592 }
 0x22d   :  { %v615_v31 = vrot.slane %v593_v32, 1 }
 0x231   :  { %v713_v26 = vpop.xlane.xlu1 %712 }
 0x232   :  { %v743_v52 = vrot.slane %v713_v26, 3 }
 0x234   :  { %v551_v39 = vpop.xlane.xlu2 %550  ;;  %v656_v43 = vpop.xlane.xlu0 %655  ;;  %v759_v8 = vadd.f32 %v743_v52, %v693_v38 }
 0x235   :  { %v631_v62 = vadd.f32 %v615_v31, %v551_v39  ;;  %v680_v23 = vrot.slane %v656_v43, 2 }
 0x239   :  { %v659_v33 = vpop.xlane.xlu1 %658 }
 0x23a   :  { %v681_v61 = vrot.slane %v659_v33, 2 }
 0x23c   :  { %v1361_v5 = vpop.xlane.xlu2 %559  ;;  %v1363_v45 = vpop.xlane.xlu0 %598  ;;  %v697_v20 = vadd.f32 %v681_v61, %v631_v62 }
 0x23d   :  { %v617_v28 = vrot.slane %v1363_v45, 1 }
 0x241   :  { %v662_v50 = vpop.xlane.xlu1 %661 }
 0x242   :  { %v682_v25 = vrot.slane %v662_v50, 2 }
 0x244   :  { %v587_v14 = vpop.xlane.xlu2 %586  ;;  %v602_v6 = vpop.xlane.xlu0 %601 }
 0x245   :  { %v613_v53 = vrot.slane %v587_v14, 1  ;;  %v618_v4 = vrot.slane %v602_v6, 1  ;;  %v696_v14 = vadd.f32 %v680_v23, %v630_v10  ;;  %v633_v6 = vadd.f32 %v617_v28, %v1359_v37 }
 0x247   :  { %v629_v49 = vadd.f32 %v613_v53, %v545_v30  ;;  %v634_v26 = vadd.f32 %v618_v4, %v1361_v5 }
 0x249   :  { %v725_v15 = vpop.xlane.xlu1 %724  ;;  %v695_v59 = vadd.f32 %v679_v16, %v629_v49 }
 0x24a   :  { %v747_v19 = vrot.slane %v725_v15, 3 }
 0x24c   :  { %v650_v40 = vpop.xlane.xlu2 %649  ;;  %v665_v34 = vpop.xlane.xlu0 %664  ;;  %v763_v32 = vadd.f32 %v747_v19, %v697_v20 }
 0x24d   :  { %v678_v0 = vrot.slane %v650_v40, 2  ;;  %v683_v21 = vrot.slane %v665_v34, 2 }
 0x24f   :  { %v694_v22 = vadd.f32 %v678_v0, %v628_v44  ;;  %v699_v45 = vadd.f32 %v683_v21, %v633_v6 }
 0x254   :  { %v596_v18 = vpop.xlane.xlu2 %595  ;;  %v728_v57 = vpop.xlane.xlu0 %727 }
 0x255   :  { %v616_v12 = vrot.slane %v596_v18, 1  ;;  %v748_v24 = vrot.slane %v728_v57, 3 }
 0x257   :  { %v632_v63 = vadd.f32 %v616_v12, %v554_v56 }
 0x259   :  { %v698_v35 = vadd.f32 %v682_v25, %v632_v63 }
 0x25b   :  { %v764_v40 = vadd.f32 %v748_v24, %v698_v35 }
 0x25c   :  { %v716_v3 = vpop.xlane.xlu2 %715  ;;  %v734_v18 = vpop.xlane.xlu0 %733 }
 0x25d   :  { %v744_v46 = vrot.slane %v716_v3, 3  ;;  %v731_v3 = vpop.xlane.xlu1 %730  ;;  %v750_v51 = vrot.slane %v734_v18, 3 }
 0x25e   :  { %v749_v53 = vrot.slane %v731_v3, 3 }
 0x25f   :  { %v760_v7 = vadd.f32 %v744_v46, %v694_v22 }
 0x260   :  { %v765_v34 = vadd.f32 %v749_v53, %v699_v45 }
 0x264   :  { %v719_v17 = vpop.xlane.xlu2 %718 }
 0x265   :  { %v745_v29 = vrot.slane %v719_v17, 3 }
 0x267   :  { %v761_v13 = vadd.f32 %v745_v29, %v695_v59 }
 0x26c   :  { %v722_v48 = vpop.xlane.xlu2 %721 }
 0x26d   :  { %v746_v39 = vrot.slane %v722_v48, 3 }
 0x26f   :  { %v762_v43 = vadd.f32 %v746_v39, %v696_v14 }
 0x274   :  { %v668_v58 = vpop.xlane.xlu2 %667 }
 0x275   :  { %v684_v42 = vrot.slane %v668_v58, 2 }
 0x277   :  { %v700_v50 = vadd.f32 %v684_v42, %v634_v26 }
 0x279   :  { %v766_v31 = vadd.f32 %v750_v51, %v700_v50 }
 0x27c   :  { %v769_v2 = vpop.permute.xlu2 %768 }
 0x27d   :  { %v773_v9 = vadd.f32 %v769_v2, %v761_v13  ;;  %v772_v47 = vadd.f32 %v769_v2, %v760_v7  ;;  %v771_v30 = vadd.f32 %v769_v2, %v759_v8  ;;  %v775_v33 = vadd.f32 %v769_v2, %v763_v32 }
 0x27e   :  { %v776_v17 = vadd.f32 %v769_v2, %v764_v40  ;;  %v774_v48 = vadd.f32 %v769_v2, %v762_v43  ;;  %v778_v58 = vadd.f32 %v769_v2, %v766_v31  ;;  %v777_v5 = vadd.f32 %v769_v2, %v765_v34 }
 0x27f   :  { %v781_v41 = vmax.f32 %v773_v9, 0.0  ;;  %v780_v11 = vmax.f32 %v772_v47, 0.0  ;;  %v779_v56 = vmax.f32 %v771_v30, 0.0  ;;  %v783_v27 = vmax.f32 %v775_v33, 0.0 }
 0x280   :  { %v784_v54 = vmax.f32 %v776_v17, 0.0  ;;  %v782_v55 = vmax.f32 %v774_v48, 0.0  ;;  %v786_v16 = vmax.f32 %v778_v58, 0.0  ;;  %v785_v49 = vmax.f32 %v777_v5, 0.0 }
 0x281   :  { %802 = vperm.xlu2 %880, %v781_v41   ;;  %799 = vperm.xlu0 %878, %v780_v11  }
 0x282   :  { %796 = vperm.xlu1 %875, %v779_v56  }
 0x289   :  { %808 = vperm.xlu0 %878, %v783_v27   ;;  %811 = vperm.xlu2 %880, %v784_v54  }
 0x28a   :  { %805 = vperm.xlu1 %875, %v782_v55  }
 0x291   :  { %817 = vperm.xlu0 %878, %v786_v16  }
 0x292   :  { %814 = vperm.xlu1 %875, %v785_v49  }
 0x2db   :  { %v803_v12 = vpop.permute.xlu2 %802 }
 0x2dc   :  { %v821_v60 = vperm.slane %v803_v12, %v1235_v1 }
 0x2e3   :  { %v812_v22 = vpop.permute.xlu2 %811 }
 0x2e4   :  { %v824_v59 = vperm.slane %v812_v22, %v1235_v1 }
 0x2f3   :  { %v800_v37 = vpop.permute.xlu0 %799 }
 0x2f4   :  { %v797_v0 = vpop.permute.xlu1 %796  ;;  %v820_v44 = vperm.slane %v800_v37, %v1235_v1 }
 0x2f5   :  { %v819_v52 = vperm.slane %v797_v0, %v1235_v1 }
 0x2f7   :  { %v827_v46 = vsel %vm260_vm7, %v820_v44, %v819_v52 }
 0x2f8   :  { %v828_v62 = vsel %vm262_vm9, %v821_v60, %v827_v46 }
 0x2fb   :  { %v809_v38 = vpop.permute.xlu0 %808 }
 0x2fc   :  { %v806_v29 = vpop.permute.xlu1 %805  ;;  %v823_v15 = vperm.slane %v809_v38, %v1235_v1 }
 0x2fd   :  { %v822_v61 = vperm.slane %v806_v29, %v1235_v1 }
 0x2ff   :  { %v829_v25 = vsel %vm264_vm10, %v822_v61, %v828_v62 }
 0x300   :  { %v830_v63 = vsel %vm266_vm11, %v823_v15, %v829_v25 }
 0x301   :  { %v831_v13 = vsel %vm268_vm12, %v824_v59, %v830_v63 }
 0x303   :  { %v818_v57 = vpop.permute.xlu0 %817 }
 0x304   :  { %v815_v8 = vpop.permute.xlu1 %814  ;;  %v826_v19 = vperm.slane %v818_v57, %v1235_v1 }
 0x305   :  { %v825_v7 = vperm.slane %v815_v8, %v1235_v1 }
 0x307   :  { %v832_v10 = vsel %vm270_vm13, %v825_v7, %v831_v13 }
 0x308   :  { %v833_v20 = vsel %vm272_vm14, %v826_v19, %v832_v10 }
 0x309   :  { %v836_v23 = vsel %vm835_vm4, %v833_v20, -inf }
 0x30a   :  { %837 = vmax.xlane.f32.xlu2 %v836_v23 }
 0x37d   :  { %v838_v24 = vpop.xlane.xlu2 %837 }
 0x37e   :  { %v844_v2 = vsel %vm843_vm5, %v838_v24, %v1357_v36 }
 0x37f   :  { %845 = vst [vmem:[#allocation10] sm:$0xff] %v844_v2 }
 0x380   :  { %856 = dma.vmem_to_hbm [thread:$0]  %s852_s13, 128, %s854_s16, [#allocation4]  }
 0x381   :  { %1008 = dma.done.wait [#allocation4], 128  }
 0x382   :  { %1009 = vsyncadd [#allocation4], 4294967168 }
 0x383   :  { %861 = vsyncpa [#allocation3], 1 }
 0x384   :  { %862 = vsyncpa [#allocation6], 1 }
 0x385   :  { %863 = vsyncpa [#allocation9], 1 }
 0x386   :  { %864 = vsyncpa [#allocation4], 1 }

</bundles_post_ra>
